<compile_context>
chip_gen: v5e
topology: v5e:2x2
jax: 0.10.0
libtpu: 0.0.40
codegen_flags: <defaults>
</compile_context>

<pallas_src>
import jax
import jax.numpy as jnp
from jax import lax
from jax.experimental import pallas as pl
from jax.experimental.pallas import tpu as pltpu


def _make_odenet_kernel(H, num_steps=1, dt=1.0):
    """Kernel body factory.

    num_steps == 1 reproduces exactly ODEnet.forward (one cell evaluation).
    num_steps > 1 fuses an explicit-Euler loop  h <- h + dt * f(h)  inside the
    kernel (state stays in VMEM/vregs across steps).
    """

    def kernel(dz_ref, w_ref, b_ref, out_ref):
        # Load once; hoist the tiny weight slices out of the (optional) loop.
        w = w_ref[...].astype(jnp.float32)          # (H, 4H) lane-dense slab
        w_hr = w[:, :H]
        w_hz = w[:, H:2 * H]
        w_hh = w[:, 2 * H:3 * H]
        w_out = w[:, 3 * H:]
        b = b_ref[...].astype(jnp.float32)          # (1, H)
        h = dz_ref[...].astype(jnp.float32)         # (block_b, H)

        def cell(hh):
            # Two separate matmuls: slicing the 32x32 weight operands is far
            # cheaper than lane-realigning the (block_b, 2H) fused rz result.
            r = jax.nn.sigmoid(jnp.dot(hh, w_hr, preferred_element_type=jnp.float32))
            z = jax.nn.sigmoid(jnp.dot(hh, w_hz, preferred_element_type=jnp.float32))
            u = jnp.tanh(jnp.dot(r * hh, w_hh, preferred_element_type=jnp.float32))
            dh = (1.0 - z) * (u - hh)
            logits = jnp.dot(dh, w_out, preferred_element_type=jnp.float32) + b
            # Numerically stable softmax over the hidden (last) axis.
            m = jnp.max(logits, axis=-1, keepdims=True)
            e = jnp.exp(logits - m)
            denom = jnp.sum(e, axis=-1, keepdims=True)
            # Exact reciprocal: approx=True (~2^-12 rel err) would break 1e-5.
            return e * pl.reciprocal(denom, approx=False)

        if num_steps == 1:
            out = cell(h)
        else:
            out = lax.fori_loop(
                0, num_steps, lambda _, hh: hh + dt * cell(hh), h, unroll=True)

        out_ref[...] = out.astype(out_ref.dtype)

    return kernel


def pack_odenet_params(w_hr, w_hz, w_hh, w_out, b_out):
    """One-time packing at parameter-init time (NOT per forward call).

    Inputs are PyTorch nn.Linear layout (out_features, in_features).
    Returns a lane-dense (H, 4H) slab [W_hr^T | W_hz^T | W_hh^T | W_out^T]
    and the bias reshaped to (1, H)."""
    w_slab = jnp.concatenate([w_hr.T, w_hz.T, w_hh.T, w_out.T], axis=1)
    return w_slab, b_out.reshape(1, -1)


def _pick_block_b(B):
    # Small batch: one tile (nothing to amortize / split).
    # Large batch: big tiles (amortize ~0.35 us/step + tiny DMAs), but keep
    # >= 2 grid steps so v7x's 2 TensorCores both get work on the "parallel"
    # axis; v5e/v6e (1 TC) simply get the large tile.
    if B <= 512:
        return B
    half = -(-B // 2)              # cdiv(B, 2)
    half = ((half + 7) // 8) * 8   # sublane-align
    return min(1024, half)


def odenet_forward(dz, w_slab, b_out2d, *, block_b=None, num_steps=1, dt=1.0):
    """dz: (B, H) float32/bfloat16; w_slab: (H, 4H); b_out2d: (1, H).
    num_steps == 1 -> softmax(out((1-z)*(u-dz)))            (module forward)
    num_steps  > 1 -> fused explicit-Euler: h += dt * f(h), num_steps times.
    Output is always float32, shape (B, H)."""
    B, H = dz.shape
    assert w_slab.shape == (H, 4 * H)
    assert b_out2d.shape == (1, H)

    if block_b is None:
        block_b = _pick_block_b(B)
    block_b = min(block_b, B)
    if block_b < B:
        block_b = max(8, (block_b // 8) * 8)   # tiles must be sublane-aligned

    # Support arbitrary batch sizes: pad, run, slice (padded rows discarded).
    n_tiles = pl.cdiv(B, block_b)
    B_pad = n_tiles * block_b
    dz_in = dz if B_pad == B else jnp.pad(dz, ((0, B_pad - B), (0, 0)))

    cost = pl.CostEstimate(
        flops=2 * B_pad * H * 4 * H * num_steps,
        transcendentals=5 * B_pad * H * num_steps,   # 2*sigmoid + tanh + exp + recip
        bytes_accessed=(B_pad * H * dz.dtype.itemsize          # dz in
                        + H * 4 * H * w_slab.dtype.itemsize    # weight slab
                        + H * b_out2d.dtype.itemsize           # bias
                        + B_pad * H * 4),                      # f32 out
    )

    out = pl.pallas_call(
        _make_odenet_kernel(H, num_steps=num_steps, dt=dt),
        # Output pinned to f32 so bf16 dz keeps the accuracy contract.
        out_shape=jax.ShapeDtypeStruct((B_pad, H), jnp.float32),
        grid=(n_tiles,),
        in_specs=[
            pl.BlockSpec((block_b, H), lambda i: (i, 0)),   # dz, pipelined over batch
            pl.BlockSpec((H, 4 * H), lambda i: (0, 0)),     # weight slab, VMEM-resident
            pl.BlockSpec((1, H), lambda i: (0, 0)),         # bias, VMEM-resident
        ],
        out_specs=pl.BlockSpec((block_b, H), lambda i: (i, 0)),
        compiler_params=pltpu.CompilerParams(
            dimension_semantics=("parallel",),
        ),
        cost_estimate=cost,
    )(dz_in, w_slab, b_out2d)

    return out if B_pad == B else out[:B]


def reference_forward(dz, w_hr, w_hz, w_hh, w_out, b_out):
    """Pure-JAX reference mirroring the PyTorch forward."""
    r = jax.nn.sigmoid(dz @ w_hr.T)
    z = jax.nn.sigmoid(dz @ w_hz.T)
    u = jnp.tanh((r * dz) @ w_hh.T)
    dh = (1.0 - z) * (u - dz)
    return jax.nn.softmax(dh @ w_out.T + b_out, axis=1)


def reference_euler(dz, w_hr, w_hz, w_hh, w_out, b_out, num_steps, dt):
    h = dz
    for _ in range(num_steps):
        h = h + dt * reference_forward(h, w_hr, w_hz, w_hh, w_out, b_out)
    return h


if __name__ == "__main__":
    H = 32  # hidden_dim (hid_size)

    key = jax.random.PRNGKey(0)
    k_dz, k_hr, k_hz, k_hh, k_out, k_b, k_big = jax.random.split(key, 7)

    # Deterministic synthetic parameters (PyTorch Linear shapes: (out, in)).
    scale = 1.0 / jnp.sqrt(jnp.float32(H))
    w_hr = jax.random.uniform(k_hr, (H, H), jnp.float32, -scale, scale)
    w_hz = jax.random.uniform(k_hz, (H, H), jnp.float32, -scale, scale)
    w_hh = jax.random.uniform(k_hh, (H, H), jnp.float32, -scale, scale)
    w_out = jax.random.uniform(k_out, (H, H), jnp.float32, -scale, scale)
    b_out = jax.random.uniform(k_b, (H,), jnp.float32, -scale, scale)

    # One-time parameter packing (lives at model init, not per call).
    w_slab, b_out2d = pack_odenet_params(w_hr, w_hz, w_hh, w_out, b_out)
    w_slab = jax.block_until_ready(w_slab)
    b_out2d = jax.block_until_ready(b_out2d)

    # 1) Single cell evaluation (exact PyTorch forward), small batch.
    B = 8
    dz = jax.random.normal(k_dz, (B, H), dtype=jnp.float32)
    out = jax.block_until_ready(odenet_forward(dz, w_slab, b_out2d))
    ref = reference_forward(dz, w_hr, w_hz, w_hh, w_out, b_out)
    assert out.shape == (B, H) and out.dtype == jnp.float32
    assert jnp.allclose(out, ref, atol=1e-5, rtol=1e-5), "mismatch vs reference"
    assert jnp.allclose(jnp.sum(out, axis=1), jnp.ones((B,)), atol=1e-5)

    # 2) Larger, non-tile-divisible batch: multi-tile grid + padding path.
    B2 = 1000
    dz2 = jax.random.normal(k_big, (B2, H), dtype=jnp.float32)
    out2 = jax.block_until_ready(odenet_forward(dz2, w_slab, b_out2d))
    ref2 = reference_forward(dz2, w_hr, w_hz, w_hh, w_out, b_out)
    assert out2.shape == (B2, H)
    assert jnp.allclose(out2, ref2, atol=1e-5, rtol=1e-5), "multi-tile mismatch"

    # 3) bf16 activations at the boundary; output stays pinned to f32.
    out_bf = jax.block_until_ready(
        odenet_forward(dz.astype(jnp.bfloat16), w_slab, b_out2d))
    assert out_bf.dtype == jnp.float32
    assert jnp.allclose(jnp.sum(out_bf, axis=1), jnp.ones((B,)), atol=1e-3)
    assert jnp.allclose(out_bf, ref, atol=5e-2), "bf16 path too far from f32 ref"

    # 4) Fused explicit-Euler integration: 4 cell evals in one pallas_call.
    out_e = jax.block_until_ready(
        odenet_forward(dz, w_slab, b_out2d, num_steps=4, dt=0.1))
    ref_e = reference_euler(dz, w_hr, w_hz, w_hh, w_out, b_out, 4, 0.1)
    assert jnp.allclose(out_e, ref_e, atol=1e-4, rtol=1e-4), "fused-Euler mismatch"

    print("KERNEL_OK")
</pallas_src>

<mosaic_0001>
module attributes {stable_mosaic.version = 11 : i64} {
  func.func @kernel(%arg0: i32, %arg1: memref<8x32xf32, #tpu.memory_space<vmem>>, %arg2: memref<32x128xf32, #tpu.memory_space<vmem>>, %arg3: memref<1x32xf32, #tpu.memory_space<vmem>>, %arg4: memref<8x32xf32, #tpu.memory_space<vmem>>) attributes {dimension_semantics = [#tpu.dimension_semantics<parallel>], iteration_bounds = array<i64: 1>, scalar_prefetch = 0 : i64, scratch_operands = 0 : i64, tpu.core_type = #tpu.core_type<tc>, window_params = [{transform_indices = @transform_0, window_bounds = array<i64: 8, 32>}, {pipeline_mode = #tpu.pipeline_mode<synchronous>, transform_indices = @transform_1, window_bounds = array<i64: 32, 128>}, {pipeline_mode = #tpu.pipeline_mode<synchronous>, transform_indices = @transform_2, window_bounds = array<i64: 1, 32>}, {transform_indices = @transform_3, window_bounds = array<i64: 8, 32>}]} {
    %c0 = arith.constant 0 : index
    %c0_0 = arith.constant 0 : index
    %0 = vector.load %arg2[%c0, %c0_0] : memref<32x128xf32, #tpu.memory_space<vmem>>, vector<32x128xf32>
    %1 = vector.extract_strided_slice %0 {offsets = [0, 0], sizes = [32, 32], strides = [1, 1]} : vector<32x128xf32> to vector<32x32xf32>
    %2 = vector.extract_strided_slice %0 {offsets = [0, 32], sizes = [32, 32], strides = [1, 1]} : vector<32x128xf32> to vector<32x32xf32>
    %3 = vector.extract_strided_slice %0 {offsets = [0, 64], sizes = [32, 32], strides = [1, 1]} : vector<32x128xf32> to vector<32x32xf32>
    %4 = vector.extract_strided_slice %0 {offsets = [0, 96], sizes = [32, 32], strides = [1, 1]} : vector<32x128xf32> to vector<32x32xf32>
    %c0_1 = arith.constant 0 : index
    %c0_2 = arith.constant 0 : index
    %5 = vector.load %arg3[%c0_1, %c0_2] : memref<1x32xf32, #tpu.memory_space<vmem>>, vector<1x32xf32>
    %c0_3 = arith.constant 0 : index
    %c0_4 = arith.constant 0 : index
    %6 = vector.load %arg1[%c0_3, %c0_4] : memref<8x32xf32, #tpu.memory_space<vmem>>, vector<8x32xf32>
    %cst = arith.constant dense<0.000000e+00> : vector<8x32xf32>
    %7 = tpu.matmul %6, %1, %cst {dimension_numbers = #tpu.dot_dimension_numbers<[1], [0], [0], [1], [0, 0, 1, 1], [], []>} : vector<8x32xf32>, vector<32x32xf32>, vector<8x32xf32> -> vector<8x32xf32>
    %8 = arith.negf %7 : vector<8x32xf32>
    %9 = math.exp %8 : vector<8x32xf32>
    %cst_5 = arith.constant 1.000000e+00 : f32
    %10 = vector.broadcast %cst_5 : f32 to vector<8x32xf32>
    %11 = arith.addf %10, %9 : vector<8x32xf32>
    %12 = arith.divf %10, %11 : vector<8x32xf32>
    %cst_6 = arith.constant dense<0.000000e+00> : vector<8x32xf32>
    %13 = tpu.matmul %6, %2, %cst_6 {dimension_numbers = #tpu.dot_dimension_numbers<[1], [0], [0], [1], [0, 0, 1, 1], [], []>} : vector<8x32xf32>, vector<32x32xf32>, vector<8x32xf32> -> vector<8x32xf32>
    %14 = arith.negf %13 : vector<8x32xf32>
    %15 = math.exp %14 : vector<8x32xf32>
    %cst_7 = arith.constant 1.000000e+00 : f32
    %16 = vector.broadcast %cst_7 : f32 to vector<8x32xf32>
    %17 = arith.addf %16, %15 : vector<8x32xf32>
    %18 = arith.divf %16, %17 : vector<8x32xf32>
    %19 = arith.mulf %12, %6 : vector<8x32xf32>
    %cst_8 = arith.constant dense<0.000000e+00> : vector<8x32xf32>
    %20 = tpu.matmul %19, %3, %cst_8 {dimension_numbers = #tpu.dot_dimension_numbers<[1], [0], [0], [1], [0, 0, 1, 1], [], []>} : vector<8x32xf32>, vector<32x32xf32>, vector<8x32xf32> -> vector<8x32xf32>
    %21 = math.tanh %20 : vector<8x32xf32>
    %cst_9 = arith.constant 1.000000e+00 : f32
    %22 = vector.broadcast %cst_9 : f32 to vector<8x32xf32>
    %23 = arith.subf %22, %18 : vector<8x32xf32>
    %24 = arith.subf %21, %6 : vector<8x32xf32>
    %25 = arith.mulf %23, %24 : vector<8x32xf32>
    %cst_10 = arith.constant dense<0.000000e+00> : vector<8x32xf32>
    %26 = tpu.matmul %25, %4, %cst_10 {dimension_numbers = #tpu.dot_dimension_numbers<[1], [0], [0], [1], [0, 0, 1, 1], [], []>} : vector<8x32xf32>, vector<32x32xf32>, vector<8x32xf32> -> vector<8x32xf32>
    %27 = vector.broadcast %5 : vector<1x32xf32> to vector<8x32xf32>
    %28 = arith.addf %26, %27 : vector<8x32xf32>
    %cst_11 = arith.constant dense<0xFF800000> : vector<8xf32>
    %29 = vector.multi_reduction <maximumf>, %28, %cst_11 [1] : vector<8x32xf32> to vector<8xf32>
    %30 = vector.shape_cast %29 : vector<8xf32> to vector<8x1xf32>
    %31 = vector.broadcast %30 : vector<8x1xf32> to vector<8x32xf32>
    %32 = arith.subf %28, %31 : vector<8x32xf32>
    %33 = math.exp %32 : vector<8x32xf32>
    %cst_12 = arith.constant dense<0.000000e+00> : vector<8xf32>
    %34 = vector.multi_reduction <add>, %33, %cst_12 [1] : vector<8x32xf32> to vector<8xf32>
    %35 = vector.shape_cast %34 : vector<8xf32> to vector<8x1xf32>
    %36 = tpu.reciprocal %35 : vector<8x1xf32> -> vector<8x1xf32>
    %37 = vector.broadcast %36 : vector<8x1xf32> to vector<8x32xf32>
    %38 = arith.mulf %33, %37 : vector<8x32xf32>
    %c0_13 = arith.constant 0 : index
    %c0_14 = arith.constant 0 : index
    %39 = vector.load %arg4[%c0_13, %c0_14] : memref<8x32xf32, #tpu.memory_space<vmem>>, vector<8x32xf32>
    tpu.vector_store %arg4[%c0_13, %c0_14], %38 {strides = array<i32>} : memref<8x32xf32, #tpu.memory_space<vmem>>, vector<8x32xf32>,
    return
  }
  func.func @transform_0(%arg0: i32) -> (i32, i32) {
    %c0_i32 = arith.constant 0 : i32
    %c0_i32_0 = arith.constant 0 : i32
    return %arg0, %c0_i32 : i32, i32
  }
  func.func @transform_1(%arg0: i32) -> (i32, i32) {
    %c0_i32 = arith.constant 0 : i32
    %c0_i32_0 = arith.constant 0 : i32
    %c0_i32_1 = arith.constant 0 : i32
    return %c0_i32, %c0_i32_0 : i32, i32
  }
  func.func @transform_2(%arg0: i32) -> (i32, i32) {
    %c0_i32 = arith.constant 0 : i32
    %c0_i32_0 = arith.constant 0 : i32
    %c0_i32_1 = arith.constant 0 : i32
    return %c0_i32, %c0_i32_0 : i32, i32
  }
  func.func @transform_3(%arg0: i32) -> (i32, i32) {
    %c0_i32 = arith.constant 0 : i32
    %c0_i32_0 = arith.constant 0 : i32
    return %arg0, %c0_i32 : i32, i32
  }
}

</mosaic_0001>

<bundles_post_ra>
// kernel: tpu_custom_call.1
= control target key start
LH: loop header
LB: loop body
LE: loop exit
PB: predicated region body
PF: predicated region fallthrough
CT: control target
= control target key end

     0   :  { %8 = vsyncpa [#allocation3], 0  ;;  %s460_s0 = inlined_call_operand.hbm [shape: f32[8,32], index: 0, kind: input, shape index: {}]   ;;  %s461_s1 = inlined_call_operand.hbm [shape: f32[32,128], index: 1, kind: input, shape index: {}]   ;;  %s462_s2 = inlined_call_operand.vmem [shape: f32[1,32], index: 2, kind: input, shape index: {}]   ;;  %s463_s3 = inlined_call_operand.hbm [shape: f32[8,32], index: 3, kind: output, shape index: {}]  }
   0x1   :  { %9 = vsyncpa [#allocation6], 0 }
   0x2   :  { %10 = vsyncpa [#allocation4], 0  ;;  %s16_s14 = sshll.u32 %s460_s0, 4  ;;  %s407_s15 = smov [#allocation2]   ;;  %s17_s14 = int_to_ptr.hbm [resolvable:$true] %s16_s14 }
   0x3   :  { %s18_s16 = sshll.u32 %s407_s15, 4  ;;  %s26_s19 = sshll.u32 %s461_s1, 4  ;;  %s19_s16 = int_to_ptr.vmem [resolvable:$true] %s18_s16  ;;  %s27_s19 = int_to_ptr.hbm [resolvable:$true] %s26_s19 }
   0x4   :  { %21 = dma.hbm_to_vmem [thread:$0]  %s17_s14, 128, %s19_s16, [#allocation3]  }
   0x5   :  { %s408_s20 = smov [#allocation5]   ;;  %s409_s22 = smov 128  }
   0x6   :  { %s28_s21 = sshll.u32 %s408_s20, 4  ;;  %s410_s23 = smov 8   ;;  %s29_s21 = int_to_ptr.vmem [resolvable:$true] %s28_s21 }
   0x7   :  { %34 = dma.hbm_to_vmem [thread:$0]  %s27_s19, 512, %s29_s21, [#allocation6], %s409_s22, %s409_s22, %s410_s23  }
   0x8   :  { %401 = dma.done.wait [#allocation3], 128  }
   0x9   :  { %402 = vsyncadd [#allocation3], 4294967168 }
   0xa   :  { %403 = dma.done.wait [#allocation6], 512  }
   0xb   :  { %404 = vsyncadd [#allocation6], 4294966784  ;;  %v48_v0 = vld [vmem:[#allocation5 + $0x18] sm:$0xff]  ;;  %v47_v1 = vld [vmem:[#allocation5 + $0x10] sm:$0xff]  ;;  %s411_s0 = smov 96   ;;  %s412_s1 = smov 64  }
   0xc   :  { %67 = vmatpush.msra.mxu0 %v48_v0  ;;  %v284_v2 = vpack.i.bf16 %v47_v1, %v48_v0  ;;  %v46_v3 = vld [vmem:[#allocation5 + $0x8] sm:$0xff]  ;;  %v45_v4 = vld [vmem:[#allocation5] sm:$0xff]  ;;  %v441_v5 = vld [vmem:[#allocation2] sm:$0xff]  ;;  %vm51_vm0 = vcmask 261120   ;;  %s413_s24 = smov 32   ;;  %s259_s30 = sshll.u32 %s463_s3, 4  ;;  %s260_s30 = int_to_ptr.hbm [resolvable:$true] %s259_s30 }
   0xd   :  { %v289_v6 = vpack.i.bf16 %v45_v4, %v46_v3  ;;  %v314_v59 = vld [vmem:[%s462_s2] ss:$0 sm:$0xff]  ;;  %s414_s2 = smov [#allocation7]  }
   0xe   :  { %68 = vmatpush.msra.mxu0 %v47_v1  ;;  %285 = vrot.lane.b32.xlu0 %v284_v2, %s411_s0  ;;  %s257_s27 = sshll.u32 %s414_s2, 4  ;;  %s258_s27 = int_to_ptr.vmem [resolvable:$true] %s257_s27 }
   0xf   :  { %295 = vrot.lane.b32.xlu1 %v284_v2, %s412_s1  ;;  %305 = vrot.lane.b32.xlu2 %v284_v2, %s413_s24 }
  0x10   :  { %69 = vmatpush.msra.mxu0 %v46_v3 }
  0x12   :  { %70 = vmatpush.msra.mxu0 %v45_v4 }
  0x13   :  { %270 = vmatmul.msk.f32.vlgmr.msra.gmra.mxu0 %vm51_vm0, %v441_v5 }
  0x16   :  { %290 = vrot.lane.b32.xlu0 %v289_v6, %s411_s0 }
  0x17   :  { %300 = vrot.lane.b32.xlu1 %v289_v6, %s412_s1  ;;  %310 = vrot.lane.b32.xlu2 %v289_v6, %s413_s24 }
  0x69   :  { %v306_v34 = vpop.permute.xlu2 %305 }
  0x6a   :  { %v307_v35 = vunpack.i.l.bf16 %v306_v34  ;;  %v308_v38 = vunpack.i.h.bf16 %v306_v34 }
  0x6c   :  { %219 = vmatpush.msra.mxu3 %v307_v35 }
  0x6e   :  { %220 = vmatpush.msra.mxu3 %v308_v38 }
  0x71   :  { %v311_v39 = vpop.permute.xlu2 %310 }
  0x72   :  { %v313_v41 = vunpack.i.h.bf16 %v311_v39  ;;  %v312_v42 = vunpack.i.l.bf16 %v311_v39 }
  0x74   :  { %221 = vmatpush.msra.mxu3 %v312_v42 }
  0x76   :  { %222 = vmatpush.msra.mxu3 %v313_v41 }
  0x80   :  { %v286_v7 = vpop.permute.xlu0 %285 }
  0x81   :  { %v287_v8 = vunpack.i.l.bf16 %v286_v7  ;;  %v288_v9 = vunpack.i.h.bf16 %v286_v7  ;;  %v296_v10 = vpop.permute.xlu1 %295 }
  0x82   :  { %v297_v11 = vunpack.i.l.bf16 %v296_v10  ;;  %v298_v12 = vunpack.i.h.bf16 %v296_v10 }
  0x83   :  { %122 = vmatpush.msra.mxu1 %v287_v8 }
  0x84   :  { %177 = vmatpush.msra.mxu2 %v297_v11 }
  0x85   :  { %123 = vmatpush.msra.mxu1 %v288_v9 }
  0x86   :  { %178 = vmatpush.msra.mxu2 %v298_v12 }
  0x88   :  { %v291_v13 = vpop.permute.xlu0 %290 }
  0x89   :  { %v292_v14 = vunpack.i.l.bf16 %v291_v13  ;;  %v293_v15 = vunpack.i.h.bf16 %v291_v13  ;;  %v301_v16 = vpop.permute.xlu1 %300 }
  0x8a   :  { %v302_v17 = vunpack.i.l.bf16 %v301_v16  ;;  %v303_v18 = vunpack.i.h.bf16 %v301_v16 }
  0x8b   :  { %124 = vmatpush.msra.mxu1 %v292_v14 }
  0x8c   :  { %179 = vmatpush.msra.mxu2 %v302_v17 }
  0x8d   :  { %125 = vmatpush.msra.mxu1 %v293_v15 }
  0x8e   :  { %272 = vmatmul.msk.f32.vlgmr.msra.gmra.mxu1 %vm51_vm0, %v441_v5  ;;  %180 = vmatpush.msra.mxu2 %v303_v18 }
  0x90   :  { %v72_v19 = vpop.f32.mrf.mxu0 }
  0x91   :  { %v271_v20 = vmul.f32 -1.442695, %v72_v19 }
  0x93   :  { %315 = vpow2.f32 %v271_v20 }
  0x99   :  { %v316_v21 = vpop.eup %315 }
  0x9a   :  { %v78_v22 = vadd.f32 1.0, %v316_v21 }
  0x9c   :  { %317 = vrcp.f32 %v78_v22  ;;  %v90_v26 = vand.u32 2147483648, %v78_v22  ;;  %v88_v28 = vand.u32 2147483647, %v78_v22  ;;  %vm84_vm2 = vweird.f32 %v78_v22 }
  0x9e   :  { %v91_v30 = vor.u32 1.1754944e-38, %v90_v26  ;;  %vm89_vm4 = vcmp.eq.f32.partialorder %v88_v28, 8.507059e+37 }
  0xa2   :  { %v318_v23 = vpop.eup %317 }
  0xa3   :  { %v80_v24 = vmul.f32 %v318_v23, %v78_v22  ;;  %vm85_vm1 = vweird.f32 %v318_v23 }
  0xa4   :  { %vm86_vm3 = vmor %vm84_vm2, %vm85_vm1 }
  0xa5   :  { %v81_v25 = vsub.f32 1.0, %v80_v24 }
  0xa7   :  { %v82_v27 = vmul.f32 %v318_v23, %v81_v25 }
  0xa9   :  { %v83_v29 = vadd.f32 %v318_v23, %v82_v27 }
  0xab   :  { %v87_v31 = vsel %vm86_vm3, %v318_v23, %v83_v29 }
  0xac   :  { %v92_v32 = vsel %vm89_vm4, %v91_v30, %v87_v31 }
  0xad   :  { %v149_v33 = vmul.f32 %v92_v32, %v441_v5 }
  0xaf   :  { %274 = vmatmul.msk.f32.vlgmr.msra.gmra.mxu2 %vm51_vm0, %v149_v33 }
 0x10b   :  { %v127_v36 = vpop.f32.mrf.mxu1 }
 0x10c   :  { %v273_v37 = vmul.f32 -1.442695, %v127_v36 }
 0x10e   :  { %319 = vpow2.f32 %v273_v37 }
 0x114   :  { %v320_v40 = vpop.eup %319 }
 0x115   :  { %v133_v43 = vadd.f32 1.0, %v320_v40 }
 0x117   :  { %321 = vrcp.f32 %v133_v43  ;;  %vm139_vm5 = vweird.f32 %v133_v43  ;;  %v145_v48 = vand.u32 2147483648, %v133_v43  ;;  %v143_v50 = vand.u32 2147483647, %v133_v43 }
 0x119   :  { %v146_v52 = vor.u32 1.1754944e-38, %v145_v48  ;;  %vm144_vm8 = vcmp.eq.f32.partialorder %v143_v50, 8.507059e+37 }
 0x11d   :  { %v322_v44 = vpop.eup %321 }
 0x11e   :  { %v135_v45 = vmul.f32 %v322_v44, %v133_v43  ;;  %vm140_vm6 = vweird.f32 %v322_v44 }
 0x11f   :  { %vm141_vm7 = vmor %vm139_vm5, %vm140_vm6 }
 0x120   :  { %v136_v46 = vsub.f32 1.0, %v135_v45 }
 0x122   :  { %v137_v47 = vmul.f32 %v322_v44, %v136_v46 }
 0x124   :  { %v138_v49 = vadd.f32 %v322_v44, %v137_v47 }
 0x126   :  { %v142_v53 = vsel %vm141_vm7, %v322_v44, %v138_v49 }
 0x127   :  { %v147_v54 = vsel %vm144_vm8, %v146_v52, %v142_v53 }
 0x128   :  { %v186_v56 = vsub.f32 1.0, %v147_v54 }
 0x132   :  { %v182_v51 = vpop.f32.mrf.mxu2 }
 0x133   :  { %323 = vtanh.f32 %v182_v51 }
 0x139   :  { %v324_v55 = vpop.eup %323 }
 0x13a   :  { %v187_v57 = vsub.f32 %v324_v55, %v441_v5 }
 0x13c   :  { %v188_v58 = vmul.f32 %v187_v57, %v186_v56 }
 0x13e   :  { %275 = vmatmul.msk.f32.vlgmr.msra.gmra.mxu3 %vm51_vm0, %v188_v58 }
 0x1c1   :  { %v224_v60 = vpop.f32.mrf.mxu3 }
 0x1c2   :  { %v225_v61 = vadd.f32 %v314_v59, %v224_v60 }
 0x1c4   :  { %v227_v62 = vsel %vm51_vm0, %v225_v61, -inf }
 0x1c5   :  { %228 = vmax.xlane.f32.xlu0 %v227_v62 }
 0x238   :  { %v229_v63 = vpop.xlane.xlu0 %228 }
 0x239   :  { %v230_v0 = vsub.f32 %v225_v61, %v229_v63 }
 0x23b   :  { %v231_v1 = vmul.f32 1.442695, %v230_v0 }
 0x23d   :  { %325 = vpow2.f32 %v231_v1 }
 0x243   :  { %v326_v2 = vpop.eup %325 }
 0x244   :  { %v233_v3 = vsel %vm51_vm0, %v326_v2, 0.0 }
 0x245   :  { %234 = vadd.xlane.f32.xlu1 %v233_v3 }
 0x2b8   :  { %v235_v4 = vpop.xlane.xlu1 %234 }
 0x2b9   :  { %327 = vrcp.f32 %v235_v4  ;;  %v247_v8 = vand.u32 2147483648, %v235_v4  ;;  %v245_v10 = vand.u32 2147483647, %v235_v4  ;;  %vm241_vm10 = vweird.f32 %v235_v4 }
 0x2bb   :  { %v248_v12 = vor.u32 1.1754944e-38, %v247_v8  ;;  %vm246_vm12 = vcmp.eq.f32.partialorder %v245_v10, 8.507059e+37 }
 0x2bf   :  { %v328_v5 = vpop.eup %327 }
 0x2c0   :  { %v237_v6 = vmul.f32 %v328_v5, %v235_v4  ;;  %vm242_vm9 = vweird.f32 %v328_v5 }
 0x2c1   :  { %vm243_vm11 = vmor %vm241_vm10, %vm242_vm9 }
 0x2c2   :  { %v238_v7 = vsub.f32 1.0, %v237_v6 }
 0x2c4   :  { %v239_v9 = vmul.f32 %v328_v5, %v238_v7 }
 0x2c6   :  { %v240_v11 = vadd.f32 %v328_v5, %v239_v9 }
 0x2c8   :  { %v244_v13 = vsel %vm243_vm11, %v328_v5, %v240_v11 }
 0x2c9   :  { %v249_v14 = vsel %vm246_vm12, %v248_v12, %v244_v13 }
 0x2ca   :  { %v250_v15 = vmul.f32 %v326_v2, %v249_v14 }
 0x2cc   :  { %251 = vst.msk [vmem:[#allocation7] sm:$0xff] %vm51_vm0, %v250_v15 }
 0x2cd   :  { %262 = dma.vmem_to_hbm [thread:$0]  %s258_s27, 128, %s260_s30, [#allocation4]  }
 0x2ce   :  { %405 = dma.done.wait [#allocation4], 128  }
 0x2cf   :  { %406 = vsyncadd [#allocation4], 4294967168 }
 0x2d0   :  { %267 = vsyncpa [#allocation3], 1 }
 0x2d1   :  { %268 = vsyncpa [#allocation6], 1 }
 0x2d2   :  { %269 = vsyncpa [#allocation4], 1 }

</bundles_post_ra>
